<compile_context>
chip_gen: v6e
topology: v6e:2x2x1
jax: 0.10.0
libtpu: 0.0.40
codegen_flags: <defaults>
</compile_context>

<pallas_src>
import math

import jax
import jax.numpy as jnp
from jax.experimental import pallas as pl
from jax.experimental.pallas import tpu as pltpu


# ---------------------------------------------------------------------------
# small helpers
# ---------------------------------------------------------------------------
def _round_up(n, m):
    return ((n + m - 1) // m) * m


def _cdiv(a, b):
    return -(-a // b)


def _pad2d(a, rows, cols):
    pr, pc = rows - a.shape[0], cols - a.shape[1]
    if pr or pc:
        a = jnp.pad(a, ((0, pr), (0, pc)))
    return a


def _tpu_vmem_capacity_bytes():
    try:
        return int(pltpu.get_tpu_info().vmem_capacity_bytes)
    except Exception:
        return 64 << 20  # conservative (v7x-sized) fallback


# ---------------------------------------------------------------------------
# kernels
# ---------------------------------------------------------------------------
def _ffn_resident_kernel(x_ref, w1_ref, b1_ref, w2_ref, b2_ref, o_ref):
    """Whole FFN for one row tile; W1/W2 fully resident (DMA'd once)."""
    h = jnp.dot(x_ref[...], w1_ref[...], preferred_element_type=jnp.float32)
    h = jnp.maximum(h + b1_ref[...].astype(jnp.float32), 0.0)      # ReLU (VPU)
    y = jnp.dot(h.astype(w2_ref.dtype), w2_ref[...],
                preferred_element_type=jnp.float32)
    o_ref[...] = (y + b2_ref[...].astype(jnp.float32)).astype(o_ref.dtype)


def _ffn_stream_inplace_kernel(x_ref, w1_ref, b1_ref, w2_ref, b2_ref, o_ref):
    """Streamed hidden tiles; f32 output block doubles as the accumulator."""
    k = pl.program_id(1)

    @pl.when(k == 0)
    def _init():
        # Fold b2 into the accumulator init (broadcast hoisted out of the loop).
        o_ref[...] = jnp.broadcast_to(b2_ref[...].astype(jnp.float32),
                                      o_ref.shape)

    h = jnp.dot(x_ref[...], w1_ref[...], preferred_element_type=jnp.float32)
    h = jnp.maximum(h + b1_ref[...].astype(jnp.float32), 0.0)
    o_ref[...] += jnp.dot(h.astype(w2_ref.dtype), w2_ref[...],
                          preferred_element_type=jnp.float32)


def _ffn_stream_scratch_kernel(x_ref, w1_ref, b1_ref, w2_ref, b2_ref, o_ref,
                               acc_ref):
    """Streamed hidden tiles; f32 scratch accumulator (non-f32 output dtype)."""
    k = pl.program_id(1)

    @pl.when(k == 0)
    def _init():
        acc_ref[...] = jnp.broadcast_to(b2_ref[...].astype(jnp.float32),
                                        acc_ref.shape)

    h = jnp.dot(x_ref[...], w1_ref[...], preferred_element_type=jnp.float32)
    h = jnp.maximum(h + b1_ref[...].astype(jnp.float32), 0.0)
    acc_ref[...] += jnp.dot(h.astype(w2_ref.dtype), w2_ref[...],
                            preferred_element_type=jnp.float32)

    @pl.when(k == pl.num_programs(1) - 1)
    def _finalize():
        o_ref[...] = acc_ref[...].astype(o_ref.dtype)


# ---------------------------------------------------------------------------
# wrapper
# ---------------------------------------------------------------------------
def prepare_params(w1, b1, w2, b2, *, compute_dtype=jnp.bfloat16):
    """Pad/cast the weights ONCE (hoisted out of the per-call hot path).

    w1: (E, H), b1: (H,), w2: (H, E), b2: (E,)  — float32, already (in, out).
    """
    E, H = w1.shape
    E_pad = _round_up(E, 128)
    H_pad = _round_up(H, 256)   # 256-multiples keep the v6e/v7x MXU full
    return dict(
        E=E, H=H, E_pad=E_pad, H_pad=H_pad, compute_dtype=compute_dtype,
        w1=_pad2d(w1, E_pad, H_pad).astype(compute_dtype),
        b1=_pad2d(b1.reshape(1, H), 1, H_pad),               # keep f32 biases
        w2=_pad2d(w2, H_pad, E_pad).astype(compute_dtype),
        b2=_pad2d(b2.reshape(1, E), 1, E_pad),
    )


def feed_forward(x, params, *, out_dtype=None, tm=None, th=None,
                 max_resident_weight_bytes=None, vmem_limit_bytes=None):
    """fc2(relu(fc1(x))).  x: (..., E); params from prepare_params()."""
    E, H = params["E"], params["H"]
    E_pad, H_pad = params["E_pad"], params["H_pad"]
    w1p, b1p, w2p, b2p = params["w1"], params["b1"], params["w2"], params["b2"]
    compute_dtype = params["compute_dtype"]

    orig_shape = x.shape
    assert orig_shape[-1] == E
    M = math.prod(orig_shape[:-1]) if len(orig_shape) > 1 else 1
    out_dtype = x.dtype if out_dtype is None else jnp.dtype(out_dtype)
    out_itemsize = jnp.dtype(out_dtype).itemsize

    # ---- per-generation VMEM budget & tile selection ----------------------
    vmem_cap = _tpu_vmem_capacity_bytes()
    small_vmem = vmem_cap <= (64 << 20)                 # v7x-like (2 TC, 64 MiB)
    if vmem_limit_bytes is None:
        vmem_limit_bytes = min(int(vmem_cap * 3 // 4), 96 << 20)

    # Row tile: sets flop/byte (~tm) against streamed weights.  Target above
    # the compute-roofline knee: ~512 on v7x, ~1024 on v5e/v6e.
    if tm is None:
        tm = 512 if small_vmem else 1024
    Mr = _round_up(max(M, 1), 16)
    if Mr <= tm:
        tm = Mr
    else:
        n_tiles = _cdiv(Mr, tm)
        if small_vmem and n_tiles > 1 and n_tiles % 2:
            n_tiles += 1                   # keep both v7x TensorCores balanced
        tm = _round_up(_cdiv(Mr, n_tiles), 16)
    M_pad = _round_up(Mr, tm)
    grid_m = M_pad // tm

    # Hidden tile: prefer 512/256 multiples (full-width MXU on v6e/v7x).
    if th is None:
        th = 512 if (H_pad % 512 == 0) else 256
    assert H_pad % th == 0, "th must divide the padded hidden size"
    grid_h = H_pad // th

    # x pad + cast (weights were prepared once, outside the hot path).
    # TODO(synk): for fully-static serving shapes, hoist the x pad/cast too.
    x2d = _pad2d(x.reshape(M, E), M_pad, E_pad).astype(compute_dtype)

    weight_bytes = (w1p.size + w2p.size) * jnp.dtype(compute_dtype).itemsize
    if max_resident_weight_bytes is None:
        max_resident_weight_bytes = vmem_limit_bytes // 6
    use_resident = weight_bytes <= max_resident_weight_bytes

    flops = 4 * M_pad * E_pad * H_pad

    if use_resident:
        # Weights DMA'd exactly once (constant block index across the grid).
        bytes_accessed = (x2d.size * x2d.dtype.itemsize + weight_bytes
                          + (b1p.size + b2p.size) * 4
                          + M_pad * E_pad * out_itemsize)
        out2d = pl.pallas_call(
            _ffn_resident_kernel,
            out_shape=jax.ShapeDtypeStruct((M_pad, E_pad), out_dtype),
            grid_spec=pltpu.PrefetchScalarGridSpec(
                num_scalar_prefetch=0,
                grid=(grid_m,),
                in_specs=[
                    pl.BlockSpec((tm, E_pad),     lambda i: (i, 0)),   # x tile
                    pl.BlockSpec((E_pad, H_pad),  lambda i: (0, 0)),   # W1
                    pl.BlockSpec((1, H_pad),      lambda i: (0, 0)),   # b1
                    pl.BlockSpec((H_pad, E_pad),  lambda i: (0, 0)),   # W2
                    pl.BlockSpec((1, E_pad),      lambda i: (0, 0)),   # b2
                ],
                out_specs=pl.BlockSpec((tm, E_pad), lambda i: (i, 0)),
            ),
            compiler_params=pltpu.CompilerParams(
                dimension_semantics=("parallel",),
                vmem_limit_bytes=vmem_limit_bytes),
            cost_estimate=pl.CostEstimate(
                flops=flops, transcendentals=0, bytes_accessed=bytes_accessed),
        )(x2d, w1p, b1p, w2p, b2p)
    else:
        # Streamed weights: re-read once per row tile — account for it.
        bytes_accessed = (x2d.size * x2d.dtype.itemsize
                          + grid_m * weight_bytes
                          + grid_m * (b1p.size + b2p.size) * 4
                          + M_pad * E_pad * out_itemsize)
        acc_in_out = out_dtype == jnp.dtype(jnp.float32)
        kernel = (_ffn_stream_inplace_kernel if acc_in_out
                  else _ffn_stream_scratch_kernel)
        scratch = [] if acc_in_out else [pltpu.VMEM((tm, E_pad), jnp.float32)]
        out2d = pl.pallas_call(
            kernel,
            out_shape=jax.ShapeDtypeStruct((M_pad, E_pad), out_dtype),
            grid_spec=pltpu.PrefetchScalarGridSpec(
                num_scalar_prefetch=0,
                grid=(grid_m, grid_h),
                in_specs=[
                    pl.BlockSpec((tm, E_pad), lambda i, k: (i, 0)),  # x tile
                    pl.BlockSpec((E_pad, th), lambda i, k: (0, k)),  # W1[:, k]
                    pl.BlockSpec((1, th),     lambda i, k: (0, k)),  # b1[k]
                    pl.BlockSpec((th, E_pad), lambda i, k: (k, 0)),  # W2[k, :]
                    pl.BlockSpec((1, E_pad),  lambda i, k: (0, 0)),  # b2
                ],
                out_specs=pl.BlockSpec((tm, E_pad), lambda i, k: (i, 0)),
                scratch_shapes=scratch,
            ),
            compiler_params=pltpu.CompilerParams(
                dimension_semantics=("parallel", "arbitrary"),
                vmem_limit_bytes=vmem_limit_bytes),
            cost_estimate=pl.CostEstimate(
                flops=flops, transcendentals=0, bytes_accessed=bytes_accessed),
        )(x2d, w1p, b1p, w2p, b2p)

    return out2d[:M, :E].reshape(orig_shape)


def init_params(key, embed_size, forward_expansion):
    """Deterministic init matching nn.Linear's default (Kaiming-uniform-ish)."""
    hidden = forward_expansion * embed_size
    k1, k2, k3, k4 = jax.random.split(key, 4)
    bound1 = 1.0 / math.sqrt(embed_size)
    bound2 = 1.0 / math.sqrt(hidden)
    # Stored already transposed to (in, out) for the kernel.
    w1 = jax.random.uniform(k1, (embed_size, hidden), jnp.float32, -bound1, bound1)
    b1 = jax.random.uniform(k2, (hidden,), jnp.float32, -bound1, bound1)
    w2 = jax.random.uniform(k3, (hidden, embed_size), jnp.float32, -bound2, bound2)
    b2 = jax.random.uniform(k4, (embed_size,), jnp.float32, -bound2, bound2)
    return w1, b1, w2, b2


if __name__ == "__main__":
    key = jax.random.PRNGKey(0)
    batch, seq, embed_size, forward_expansion = 2, 8, 32, 4

    kx, kp = jax.random.split(key)
    x = jax.random.normal(kx, (batch, seq, embed_size), jnp.float32)
    w1, b1, w2, b2 = init_params(kp, embed_size, forward_expansion)
    params = prepare_params(w1, b1, w2, b2)       # pad/cast once, not per call

    # Pure-JAX f32 reference (bf16 operands / f32 accumulation => loose tol).
    ref = jnp.maximum(x @ w1 + b1, 0.0) @ w2 + b2

    # 1) Resident-weight fast path (weights fit easily in VMEM at this size).
    out_res = jax.block_until_ready(feed_forward(x, params))
    assert out_res.shape == (batch, seq, embed_size)
    assert jnp.allclose(out_res, ref, atol=2e-2, rtol=2e-2), float(
        jnp.max(jnp.abs(out_res - ref)))

    # 2) Streamed-weight path, f32 output -> accumulate in-place into o_ref
    #    (th=128 forces two hidden tiles so the k-accumulation is exercised).
    out_str = jax.block_until_ready(
        feed_forward(x, params, max_resident_weight_bytes=0, th=128))
    assert jnp.allclose(out_str, ref, atol=2e-2, rtol=2e-2), float(
        jnp.max(jnp.abs(out_str - ref)))

    # 3) Streamed-weight path, bf16 output -> f32 scratch accumulator variant.
    out_bf16 = jax.block_until_ready(
        feed_forward(x, params, max_resident_weight_bytes=0, th=128,
                     out_dtype=jnp.bfloat16))
    assert jnp.allclose(out_bf16.astype(jnp.float32), ref,
                        atol=4e-2, rtol=4e-2), float(
        jnp.max(jnp.abs(out_bf16.astype(jnp.float32) - ref)))

    print("KERNEL_OK")
</pallas_src>

<mosaic_0001>
module attributes {stable_mosaic.version = 11 : i64} {
  func.func @_ffn_resident_kernel(%arg0: i32, %arg1: memref<16x128xbf16, #tpu.memory_space<vmem>>, %arg2: memref<128x256xbf16, #tpu.memory_space<vmem>>, %arg3: memref<1x256xf32, #tpu.memory_space<vmem>>, %arg4: memref<256x128xbf16, #tpu.memory_space<vmem>>, %arg5: memref<1x128xf32, #tpu.memory_space<vmem>>, %arg6: memref<16x128xf32, #tpu.memory_space<vmem>>) attributes {dimension_semantics = [#tpu.dimension_semantics<parallel>], iteration_bounds = array<i64: 1>, scalar_prefetch = 0 : i64, scratch_operands = 0 : i64, tpu.core_type = #tpu.core_type<tc>, window_params = [{transform_indices = @transform_0, window_bounds = array<i64: 16, 128>}, {pipeline_mode = #tpu.pipeline_mode<synchronous>, transform_indices = @transform_1, window_bounds = array<i64: 128, 256>}, {pipeline_mode = #tpu.pipeline_mode<synchronous>, transform_indices = @transform_2, window_bounds = array<i64: 1, 256>}, {pipeline_mode = #tpu.pipeline_mode<synchronous>, transform_indices = @transform_3, window_bounds = array<i64: 256, 128>}, {pipeline_mode = #tpu.pipeline_mode<synchronous>, transform_indices = @transform_4, window_bounds = array<i64: 1, 128>}, {transform_indices = @transform_5, window_bounds = array<i64: 16, 128>}]} {
    %c0 = arith.constant 0 : index
    %c0_0 = arith.constant 0 : index
    %0 = vector.load %arg1[%c0, %c0_0] : memref<16x128xbf16, #tpu.memory_space<vmem>>, vector<16x128xbf16>
    %c0_1 = arith.constant 0 : index
    %c0_2 = arith.constant 0 : index
    %1 = vector.load %arg2[%c0_1, %c0_2] : memref<128x256xbf16, #tpu.memory_space<vmem>>, vector<128x256xbf16>
    %cst = arith.constant dense<0.000000e+00> : vector<16x256xf32>
    %2 = tpu.matmul %0, %1, %cst {dimension_numbers = #tpu.dot_dimension_numbers<[1], [0], [0], [1], [0, 0, 1, 1], [], []>} : vector<16x128xbf16>, vector<128x256xbf16>, vector<16x256xf32> -> vector<16x256xf32>
    %c0_3 = arith.constant 0 : index
    %c0_4 = arith.constant 0 : index
    %3 = vector.load %arg3[%c0_3, %c0_4] : memref<1x256xf32, #tpu.memory_space<vmem>>, vector<1x256xf32>
    %4 = vector.broadcast %3 : vector<1x256xf32> to vector<16x256xf32>
    %5 = arith.addf %2, %4 : vector<16x256xf32>
    %cst_5 = arith.constant 0.000000e+00 : f32
    %6 = vector.broadcast %cst_5 : f32 to vector<16x256xf32>
    %7 = arith.maximumf %5, %6 : vector<16x256xf32>
    %8 = arith.truncf %7 : vector<16x256xf32> to vector<16x256xbf16>
    %c0_6 = arith.constant 0 : index
    %c0_7 = arith.constant 0 : index
    %9 = vector.load %arg4[%c0_6, %c0_7] : memref<256x128xbf16, #tpu.memory_space<vmem>>, vector<256x128xbf16>
    %cst_8 = arith.constant dense<0.000000e+00> : vector<16x128xf32>
    %10 = tpu.matmul %8, %9, %cst_8 {dimension_numbers = #tpu.dot_dimension_numbers<[1], [0], [0], [1], [0, 0, 1, 1], [], []>} : vector<16x256xbf16>, vector<256x128xbf16>, vector<16x128xf32> -> vector<16x128xf32>
    %c0_9 = arith.constant 0 : index
    %c0_10 = arith.constant 0 : index
    %11 = vector.load %arg5[%c0_9, %c0_10] : memref<1x128xf32, #tpu.memory_space<vmem>>, vector<1x128xf32>
    %12 = vector.broadcast %11 : vector<1x128xf32> to vector<16x128xf32>
    %13 = arith.addf %10, %12 : vector<16x128xf32>
    %c0_11 = arith.constant 0 : index
    %c0_12 = arith.constant 0 : index
    %14 = vector.load %arg6[%c0_11, %c0_12] : memref<16x128xf32, #tpu.memory_space<vmem>>, vector<16x128xf32>
    tpu.vector_store %arg6[%c0_11, %c0_12], %13 {strides = array<i32>} : memref<16x128xf32, #tpu.memory_space<vmem>>, vector<16x128xf32>,
    return
  }
  func.func @transform_0(%arg0: i32) -> (i32, i32) {
    %c0_i32 = arith.constant 0 : i32
    %c0_i32_0 = arith.constant 0 : i32
    return %arg0, %c0_i32 : i32, i32
  }
  func.func @transform_1(%arg0: i32) -> (i32, i32) {
    %c0_i32 = arith.constant 0 : i32
    %c0_i32_0 = arith.constant 0 : i32
    %c0_i32_1 = arith.constant 0 : i32
    return %c0_i32, %c0_i32_0 : i32, i32
  }
  func.func @transform_2(%arg0: i32) -> (i32, i32) {
    %c0_i32 = arith.constant 0 : i32
    %c0_i32_0 = arith.constant 0 : i32
    %c0_i32_1 = arith.constant 0 : i32
    return %c0_i32, %c0_i32_0 : i32, i32
  }
  func.func @transform_3(%arg0: i32) -> (i32, i32) {
    %c0_i32 = arith.constant 0 : i32
    %c0_i32_0 = arith.constant 0 : i32
    %c0_i32_1 = arith.constant 0 : i32
    return %c0_i32, %c0_i32_0 : i32, i32
  }
  func.func @transform_4(%arg0: i32) -> (i32, i32) {
    %c0_i32 = arith.constant 0 : i32
    %c0_i32_0 = arith.constant 0 : i32
    %c0_i32_1 = arith.constant 0 : i32
    return %c0_i32, %c0_i32_0 : i32, i32
  }
  func.func @transform_5(%arg0: i32) -> (i32, i32) {
    %c0_i32 = arith.constant 0 : i32
    %c0_i32_0 = arith.constant 0 : i32
    return %arg0, %c0_i32 : i32, i32
  }
}

</mosaic_0001>

<bundles_post_ra>
// kernel: tpu_custom_call.1
= control target key start
LH: loop header
LB: loop body
LE: loop exit
PB: predicated region body
PF: predicated region fallthrough
CT: control target
= control target key end

     0   :  { %10 = vsyncpa [#allocation3], 0  ;;  %s679_s0 = inlined_call_operand.hbm [shape: bf16[16,128], index: 0, kind: input, shape index: {}]   ;;  %s680_s1 = inlined_call_operand.hbm [shape: bf16[128,256], index: 1, kind: input, shape index: {}]   ;;  %s681_s2 = inlined_call_operand.vmem [shape: f32[1,256], index: 2, kind: input, shape index: {}]   ;;  %s682_s3 = inlined_call_operand.hbm [shape: bf16[256,128], index: 3, kind: input, shape index: {}]   ;;  %s683_s4 = inlined_call_operand.vmem [shape: f32[1,128], index: 4, kind: input, shape index: {}]   ;;  %s684_s5 = inlined_call_operand.hbm [shape: f32[16,128], index: 5, kind: output, shape index: {}]  }
   0x1   :  { %11 = vsyncpa [#allocation6], 0 }
   0x2   :  { %12 = vsyncpa [#allocation4], 0  ;;  %s616_s18 = smov [#allocation5]  }
   0x3   :  { %s30_s19 = sshll.u32 %s616_s18, 4  ;;  %s31_s19 = int_to_ptr.vmem [resolvable:$true] %s30_s19 }
   0x4   :  { %s538_s20 = scalar_lea.vmem %s31_s19, 2048  ;;  %p543_p1 = scmp.lt.s32.totalorder %s31_s19, %s31_s19 }
   0x5   :  { %p539_p0 = scmp.ne.s32.totalorder %s31_s19, %s538_s20  ;;  %p544_p2 = scmp.lt.s32.totalorder %s538_s20, %s538_s20 }
   0x7   :  { %p545_p3 = por %p544_p2, %p543_p1 }
   0x9   :  { %p546_p4 = pnand %p545_p3, %p539_p0 }
   0xb   :  { %549 = shalt.err (!%p546_p4)
}
   0xc   :  { %s617_s21 = smov 128   ;;  %s618_s22 = smov 8  }
   0xd   :  { %36 = dma.hbm_to_vmem [thread:$0]  %s680_s1, 2048, %s31_s19, [#allocation6], %s617_s21, %s617_s21, %s618_s22  }
   0xe   :  { %s619_s25 = smov [#allocation2]  }
   0xf   :  { %s18_s26 = sshll.u32 %s619_s25, 4  ;;  %s19_s26 = int_to_ptr.vmem [resolvable:$true] %s18_s26 }
  0x10   :  { %s558_s27 = scalar_lea.vmem %s19_s26, 128  ;;  %p563_p6 = scmp.lt.s32.totalorder %s19_s26, %s19_s26 }
  0x11   :  { %p559_p5 = scmp.ne.s32.totalorder %s19_s26, %s558_s27  ;;  %p564_p7 = scmp.lt.s32.totalorder %s558_s27, %s558_s27 }
  0x13   :  { %p565_p8 = por %p564_p7, %p563_p6 }
  0x15   :  { %p566_p9 = pnand %p565_p8, %p559_p5 }
  0x17   :  { %569 = shalt.err (!%p566_p9)
}
  0x18   :  { %s620_s28 = smov 64   ;;  %s621_s29 = smov 4  }
  0x19   :  { %24 = dma.hbm_to_vmem [thread:$0]  %s679_s0, 128, %s19_s26, [#allocation3], %s620_s28, %s620_s28, %s621_s29  }
  0x1a   :  { %s622_s7 = smov [#allocation7]  }
  0x1b   :  { %s44_s8 = sshll.u32 %s622_s7, 4  ;;  %s45_s8 = int_to_ptr.vmem [resolvable:$true] %s44_s8 }
  0x1c   :  { %s578_s1 = scalar_lea.vmem %s45_s8, 2048  ;;  %p583_p11 = scmp.lt.s32.totalorder %s45_s8, %s45_s8 }
  0x1d   :  { %p579_p10 = scmp.ne.s32.totalorder %s45_s8, %s578_s1  ;;  %p584_p12 = scmp.lt.s32.totalorder %s578_s1, %s578_s1 }
  0x1f   :  { %p585_p13 = por %p584_p12, %p583_p11 }
  0x21   :  { %p586_p0 = pnand %p585_p13, %p579_p10 }
  0x23   :  { %589 = shalt.err (!%p586_p0)
}
  0x24   :  { %50 = dma.hbm_to_vmem [thread:$0]  %s682_s3, 2048, %s45_s8, [#allocation6], %s620_s28, %s620_s28, %s621_s29  }
  0x25   :  { %610 = dma.done.wait [#allocation3], 128  }
  0x26   :  { %611 = vsyncadd [#allocation3], 4294967168 }
  0x27   :  { %612 = dma.done.wait [#allocation6], 4096  }
  0x28   :  { %613 = vsyncadd [#allocation6], 4294963200  ;;  %v623_v0 = vmov 0   ;;  %v489_v1 = vld [vmem:[#allocation5 + $0x74] ss:$8 sps:$4 sm:$0xff]   ;;  %v518_v16 = vld [vmem:[#allocation7 + $0x68] sm:$0xff]   ;;  %v83_v34 = vlaneseq }
  0x29   :  { %211 = vmatprep.mubr.bf16.mxu0 %v623_v0  ;;  %v491_v2 = vld [vmem:[#allocation5 + $0x70] ss:$8 sps:$4 sm:$0xff]   ;;  %179 = vmatprep.subr.bf16.mxu0 %v489_v1  ;;  %v492_v3 = vld [vmem:[#allocation5 + $0x64] ss:$8 sps:$4 sm:$0xff]   ;;  %v494_v4 = vld [vmem:[#allocation5 + $0x60] ss:$8 sps:$4 sm:$0xff]  }
  0x2a   :  { %180 = vmatpush1.bf16.msra.mxu0 %v491_v2  ;;  %v495_v5 = vld [vmem:[#allocation5 + $0x54] ss:$8 sps:$4 sm:$0xff]   ;;  %v497_v6 = vld [vmem:[#allocation5 + $0x50] ss:$8 sps:$4 sm:$0xff]   ;;  %v498_v7 = vld [vmem:[#allocation5 + $0x44] ss:$8 sps:$4 sm:$0xff]  }
  0x2b   :  { %181 = vmatprep.subr.bf16.mxu0 %v492_v3  ;;  %v500_v8 = vld [vmem:[#allocation5 + $0x40] ss:$8 sps:$4 sm:$0xff]   ;;  %v501_v9 = vld [vmem:[#allocation5 + $0x34] ss:$8 sps:$4 sm:$0xff]   ;;  %v503_v11 = vld [vmem:[#allocation5 + $0x30] ss:$8 sps:$4 sm:$0xff]  }
  0x2c   :  { %v514_v10 = vld [vmem:[#allocation7 + $0x78] sm:$0xff]   ;;  %v504_v13 = vld [vmem:[#allocation5 + $0x24] ss:$8 sps:$4 sm:$0xff]   ;;  %v516_v14 = vld [vmem:[#allocation7 + $0x70] sm:$0xff]   ;;  %v84_v35 = vshrl.u32 %v83_v34, 7  ;;  %s624_s12 = smov [#allocation8]  }
  0x2d   :  { %v515_v12 = vld [vmem:[#allocation7 + $0x38] sm:$0xff]   ;;  %458 = vmatprep.subr.bf16.mxu1 %v514_v10  ;;  %v517_v15 = vld [vmem:[#allocation7 + $0x30] sm:$0xff]   ;;  %v506_v17 = vld [vmem:[#allocation5 + $0x20] ss:$8 sps:$4 sm:$0xff]   ;;  %s411_s13 = sshll.u32 %s624_s12, 4  ;;  %s412_s13 = int_to_ptr.vmem [resolvable:$true] %s411_s13 }
  0x2e   :  { %182 = vmatpush1.bf16.msra.mxu0 %v494_v4  ;;  %459 = vmatpush3.bf16.msra.mxu1 %v515_v12  ;;  %v507_v18 = vld [vmem:[#allocation5 + $0x14] ss:$8 sps:$4 sm:$0xff]   ;;  %v519_v19 = vld [vmem:[#allocation7 + $0x28] sm:$0xff]   ;;  %v520_v20 = vld [vmem:[#allocation7 + $0x60] sm:$0xff]   ;;  %v89_v36 = vsub.s32 1, %v84_v35  ;;  %v85_v37 = vsub.s32 0, %v84_v35  ;;  %p595_p2 = scmp.lt.s32.totalorder %s412_s13, %s412_s13 }
  0x2f   :  { %183 = vmatprep.subr.bf16.mxu0 %v495_v5  ;;  %460 = vmatprep.subr.bf16.mxu1 %v516_v14  ;;  %v509_v21 = vld [vmem:[#allocation5 + $0x10] ss:$8 sps:$4 sm:$0xff]   ;;  %v521_v22 = vld [vmem:[#allocation7 + $0x20] sm:$0xff]   ;;  %v526_v30 = vld [vmem:[#allocation7 + $0x48] sm:$0xff]   ;;  %s590_s14 = scalar_lea.vmem %s412_s13, 256 }
  0x30   :  { %v510_v23 = vld [vmem:[#allocation5 + $0x4] ss:$8 sps:$4 sm:$0xff]   ;;  %v522_v24 = vld [vmem:[#allocation7 + $0x58] sm:$0xff]   ;;  %v512_v25 = vld [vmem:[#allocation5] ss:$8 sps:$4 sm:$0xff]   ;;  %p591_p1 = scmp.ne.s32.totalorder %s412_s13, %s590_s14  ;;  %p596_p3 = scmp.lt.s32.totalorder %s590_s14, %s590_s14 }
  0x31   :  { %v523_v26 = vld [vmem:[#allocation7 + $0x18] sm:$0xff]   ;;  %v524_v28 = vld [vmem:[#allocation7 + $0x50] sm:$0xff]   ;;  %v527_v31 = vld [vmem:[#allocation7 + $0x8] sm:$0xff]  }
  0x32   :  { %184 = vmatpush1.bf16.msra.mxu0 %v497_v6  ;;  %461 = vmatpush3.bf16.msra.mxu1 %v517_v15  ;;  %v513_v27 = vld [vmem:[#allocation2] sm:$0xff]   ;;  %v525_v29 = vld [vmem:[#allocation7 + $0x10] sm:$0xff]   ;;  %v528_v32 = vld [vmem:[#allocation7 + $0x40] sm:$0xff]   ;;  %p597_p4 = por %p596_p3, %p595_p2 }
  0x33   :  { %185 = vmatprep.subr.bf16.mxu0 %v498_v7  ;;  %462 = vmatprep.subr.bf16.mxu1 %v518_v16  ;;  %v529_v33 = vld [vmem:[#allocation7] sm:$0xff]   ;;  %v81_v38 = vld [vmem:[%s681_s2] sm:$0x3] }
  0x34   :  { %v90_v40 = vrot.slane %v81_v38, %v89_v36  ;;  %v86_v41 = vrot.slane %v81_v38, %v85_v37  ;;  %v441_v56 = vld [vmem:[%s683_s4] ss:$0 sm:$0xff]  ;;  %p598_p5 = pnand %p597_p4, %p591_p1 }
  0x36   :  { %186 = vmatpush1.bf16.msra.mxu0 %v500_v8  ;;  %463 = vmatpush3.bf16.msra.mxu1 %v519_v19 }
  0x37   :  { %187 = vmatprep.subr.bf16.mxu0 %v501_v9  ;;  %464 = vmatprep.subr.bf16.mxu1 %v520_v20 }
  0x3a   :  { %188 = vmatpush1.bf16.msra.mxu0 %v503_v11  ;;  %465 = vmatpush3.bf16.msra.mxu1 %v521_v22 }
  0x3b   :  { %189 = vmatprep.subr.bf16.mxu0 %v504_v13  ;;  %466 = vmatprep.subr.bf16.mxu1 %v522_v24 }
  0x3e   :  { %190 = vmatpush1.bf16.msra.mxu0 %v506_v17  ;;  %467 = vmatpush3.bf16.msra.mxu1 %v523_v26 }
  0x3f   :  { %191 = vmatprep.subr.bf16.mxu0 %v507_v18  ;;  %468 = vmatprep.subr.bf16.mxu1 %v524_v28 }
  0x42   :  { %192 = vmatpush1.bf16.msra.mxu0 %v509_v21  ;;  %469 = vmatpush3.bf16.msra.mxu1 %v525_v29 }
  0x43   :  { %193 = vmatprep.subr.bf16.mxu0 %v510_v23  ;;  %470 = vmatprep.subr.bf16.mxu1 %v526_v30 }
  0x46   :  { %194 = vmatpush1.bf16.msra.mxu0 %v512_v25  ;;  %471 = vmatpush3.bf16.msra.mxu1 %v527_v31 }
  0x47   :  { %472 = vmatprep.subr.bf16.mxu1 %v528_v32 }
  0x49   :  { %212 = vmatmul.mubr.bf16.vlgmr.msra.gmra.mxu0 %v513_v27 }
  0x4a   :  { %473 = vmatpush3.bf16.msra.mxu1 %v529_v33 }
 0x109   :  { %v213_v39 = vpop.f32.mrf.mxu0 }
 0x10a   :  { %v214_v46 = vadd.f32 %v213_v39, %v86_v41 }
 0x10b   :  { %v215_v42 = vpop.f32.mrf.mxu0 }
 0x10c   :  { %v216_v44 = vadd.f32 %v215_v42, %v90_v40  ;;  %v222_v52 = vmax.f32 %v214_v46, 0.0 }
 0x10d   :  { %v217_v43 = vpop.f32.mrf.mxu0 }
 0x10e   :  { %v218_v45 = vadd.f32 %v217_v43, %v86_v41  ;;  %v223_v50 = vmax.f32 %v216_v44, 0.0 }
 0x10f   :  { %v219_v47 = vpop.f32.mrf.mxu0 }
 0x110   :  { %v220_v48 = vadd.f32 %v219_v47, %v90_v40  ;;  %v224_v49 = vmax.f32 %v218_v45, 0.0 }
 0x112   :  { %v225_v51 = vmax.f32 %v220_v48, 0.0  ;;  %v226_v54 = vpack.c.bf16 %v224_v49, %v222_v52 }
 0x114   :  { %v227_v53 = vpack.c.bf16 %v225_v51, %v223_v50 }
 0x116   :  { %395 = vmatprep.mubr.bf16.mxu1 %v227_v53 }
 0x117   :  { %396 = vmatmul.mubr.bf16.vlgmr.msra.gmra.mxu1 %v226_v54 }
 0x1d7   :  { %v474_v55 = vpop.f32.mrf.mxu1 }
 0x1d9   :  { %v475_v57 = vpop.f32.mrf.mxu1 }
 0x1da   :  { %v476_v58 = vadd.f32 %v475_v57, %v474_v55 }
 0x1db   :  { %v477_v59 = vpop.f32.mrf.mxu1 }
 0x1dc   :  { %v398_v60 = vadd.f32 %v476_v58, %v441_v56 }
 0x1dd   :  { %v478_v61 = vpop.f32.mrf.mxu1 }
 0x1de   :  { %404 = vst [vmem:[#allocation8] sm:$0xff] %v398_v60  ;;  %v479_v62 = vadd.f32 %v478_v61, %v477_v59 }
 0x1e0   :  { %v401_v63 = vadd.f32 %v479_v62, %v441_v56 }
 0x1e2   :  { %405 = vst [vmem:[#allocation8 + $0x8] sm:$0xff] %v401_v63 }
 0x1e3   :  { %601 = shalt.err (!%p598_p5)
}
 0x1e4   :  { %417 = dma.vmem_to_hbm [thread:$0]  %s412_s13, 256, %s684_s5, [#allocation4], %s617_s21, %s617_s21, %s618_s22  }
 0x1e5   :  { %614 = dma.done.wait [#allocation4], 256  }
 0x1e6   :  { %615 = vsyncadd [#allocation4], 4294967040 }
 0x1e7   :  { %421 = vsyncpa [#allocation3], 1 }
 0x1e8   :  { %422 = vsyncpa [#allocation6], 1 }
 0x1e9   :  { %423 = vsyncpa [#allocation4], 1 }

</bundles_post_ra>
